<compile_context>
chip_gen: v7x
topology: tpu7x:2x2x1
jax: 0.10.0
libtpu: 0.0.40
codegen_flags: <defaults>
</compile_context>

<pallas_src>
import functools

import jax
import jax.numpy as jnp
from jax.experimental import pallas as pl
from jax.experimental.pallas import tpu as pltpu


def _round_up(x, m):
    return (x + m - 1) // m * m


def _choose_batch_tile(B, batch_tile, sublane):
    """Sublane-aligned batch tile with low last-tile waste; >=2 grid steps for
    medium/large batches so both v7x TensorCores get work."""
    batch_tile = max(sublane, _round_up(min(int(batch_tile), 1024), sublane))
    full = _round_up(B, sublane)
    if full <= batch_tile:
        if B > 64:
            # Split the single full-batch step into two (megacore).
            return _round_up((full + 1) // 2, sublane)
        return full
    # Large batch: pick among lane/sublane-friendly sizes minimizing the dead
    # rows in the last tile (bt=256 at B=257 wastes 255 rows; 128 halves it).
    cands = sorted({c for c in (128, 256, 512, 1024, batch_tile)
                    if sublane <= c <= batch_tile and c % sublane == 0})
    return min(cands, key=lambda c: (_round_up(B, c) - B, -c))


def _mlp_kernel(x_ref, w1_ref, b1_ref, w2_ref, b2_ref, w3_ref, b3_ref, o_ref):
    """Fused 3-layer MLP on one batch tile. All operands are VMEM tiles.

    x arrives in its original dtype with an UNPADDED feature axis and is cast
    to the weight (compute) dtype here.  Matmuls accumulate in f32; bias-add
    and ReLU stay f32; only the next MXU input is re-cast.
    """
    cdt = w1_ref.dtype
    x = x_ref[...].astype(cdt)
    # Layer 1: Linear + ReLU
    h1 = jnp.dot(x, w1_ref[...], preferred_element_type=jnp.float32) + b1_ref[...]
    h1 = jnp.maximum(h1, 0.0).astype(cdt)
    # Layer 2: Linear + ReLU
    h2 = jnp.dot(h1, w2_ref[...], preferred_element_type=jnp.float32) + b2_ref[...]
    h2 = jnp.maximum(h2, 0.0).astype(cdt)
    # Layer 3: Linear (no activation)
    out = jnp.dot(h2, w3_ref[...], preferred_element_type=jnp.float32) + b3_ref[...]
    o_ref[...] = out.astype(o_ref.dtype)


def prepare_params(w1, b1, w2, b2, w3, b3, compute_dtype=jnp.bfloat16):
    """One-time lane-dense padding + cast of the MLP parameters.

    Call ONCE (at model init / after parameter updates), keep the result, and
    pass it to `mlp_forward` on every call -- the per-call path then contains
    no weight padding/cast copies.

    Weights are stored [fan_in, fan_out] (transposed vs. PyTorch [out, in]).
    Only hidden / output feature axes are padded to a multiple of 128; the
    network input axis is left unpadded because x streams unpadded.  Zero
    padding is exact: padded hidden units get weight 0 / bias 0 -> ReLU -> 0,
    padded rows of the next weight contribute nothing, padded output columns
    are sliced off by the wrapper.  Biases stay f32 (added post-accumulate).
    """
    cdt = jnp.dtype(compute_dtype)
    in_dim, hidden = w1.shape
    out_dim = w3.shape[1]
    h_p = _round_up(hidden, 128)
    out_p = _round_up(out_dim, 128)

    w1p = jnp.zeros((in_dim, h_p), cdt).at[:, :hidden].set(w1.astype(cdt))
    w2p = jnp.zeros((h_p, h_p), cdt).at[:hidden, :hidden].set(w2.astype(cdt))
    w3p = jnp.zeros((h_p, out_p), cdt).at[:hidden, :out_dim].set(w3.astype(cdt))
    b1p = jnp.zeros((1, h_p), jnp.float32).at[:, :hidden].set(
        b1.astype(jnp.float32).reshape(1, -1))
    b2p = jnp.zeros((1, h_p), jnp.float32).at[:, :hidden].set(
        b2.astype(jnp.float32).reshape(1, -1))
    b3p = jnp.zeros((1, out_p), jnp.float32).at[:, :out_dim].set(
        b3.astype(jnp.float32).reshape(1, -1))
    return w1p, b1p, w2p, b2p, w3p, b3p


@functools.partial(jax.jit, static_argnames=("out_dim", "batch_tile"))
def mlp_forward(x, w1p, b1p, w2p, b2p, w3p, b3p, *, out_dim, batch_tile=512):
    """x: [B, in_dim] (unpadded). Padded params from `prepare_params`."""
    out_dtype = x.dtype
    B, in_dim = x.shape
    h_p = w1p.shape[1]
    out_p = w3p.shape[1]
    cdt = w1p.dtype

    sublane = 16 if cdt == jnp.bfloat16 else 8
    bt = _choose_batch_tile(B, batch_tile, sublane)
    Bp = _round_up(B, bt)
    grid = (Bp // bt,)

    # Only the batch axis is ever padded (cheap: in_dim columns, not 128).
    xp = x if Bp == B else jnp.pad(x, ((0, Bp - B), (0, 0)))

    # VMEM budget from the real block bytes (conservative: 2 buffers each),
    # so medium hidden sizes don't trip v7x's 32 MiB default scoped limit.
    cdt_b = jnp.dtype(cdt).itemsize
    vmem_need = (
        bt * in_dim * xp.dtype.itemsize * 2                       # x tiles
        + bt * out_p * jnp.dtype(out_dtype).itemsize * 2          # out tiles
        + (in_dim * h_p + h_p * h_p + h_p * out_p) * cdt_b * 2    # weights
        + (2 * h_p + out_p) * 4 * 2                               # biases
        + bt * h_p * 4 * 4                                        # f32 temporaries
    )
    vmem_limit = int(min(max(vmem_need + (4 << 20), 32 << 20), 100 << 20))

    # Advisory cost estimate so XLA can overlap this call with neighbors.
    flops = 2 * Bp * (in_dim * h_p + h_p * h_p + h_p * out_p)
    bytes_accessed = (
        xp.size * xp.dtype.itemsize
        + (w1p.size + w2p.size + w3p.size) * cdt_b
        + (b1p.size + b2p.size + b3p.size) * 4
        + Bp * out_p * jnp.dtype(out_dtype).itemsize
    )
    cost = pl.CostEstimate(flops=flops, transcendentals=0,
                           bytes_accessed=bytes_accessed)

    in_specs = [
        # x: batch-tiled, feature axis unpadded (last dim == full array dim).
        pl.BlockSpec((bt, in_dim), lambda i: (i, 0)),
        # Weights/biases: constant index map -> DMA'd once, VMEM-resident.
        pl.BlockSpec((in_dim, h_p), lambda i: (0, 0)),
        pl.BlockSpec((1, h_p), lambda i: (0, 0)),
        pl.BlockSpec((h_p, h_p), lambda i: (0, 0)),
        pl.BlockSpec((1, h_p), lambda i: (0, 0)),
        pl.BlockSpec((h_p, out_p), lambda i: (0, 0)),
        pl.BlockSpec((1, out_p), lambda i: (0, 0)),
    ]
    # Lane-dense output tile (unmasked vst writeback); sliced below.
    out_specs = pl.BlockSpec((bt, out_p), lambda i: (i, 0))

    out_padded = pl.pallas_call(
        _mlp_kernel,
        out_shape=jax.ShapeDtypeStruct((Bp, out_p), out_dtype),
        grid_spec=pltpu.PrefetchScalarGridSpec(
            num_scalar_prefetch=0,
            grid=grid,
            in_specs=in_specs,
            out_specs=out_specs,
        ),
        compiler_params=pltpu.CompilerParams(
            dimension_semantics=("parallel",),
            vmem_limit_bytes=vmem_limit,
        ),
        cost_estimate=cost,
    )(xp, w1p, b1p, w2p, b2p, w3p, b3p)

    return out_padded[:B, :out_dim]


def init_linear_params(key, fan_in, fan_out):
    """Deterministic init matching nn.Linear default: U(-1/sqrt(fan_in), +)."""
    kw, kb = jax.random.split(key)
    bound = 1.0 / (fan_in ** 0.5)
    # Stored [in, out] (transposed vs PyTorch's [out, in]).
    w = jax.random.uniform(kw, (fan_in, fan_out), jnp.float32, -bound, bound)
    b = jax.random.uniform(kb, (1, fan_out), jnp.float32, -bound, bound)
    return w, b


def mlp_reference(x, w1, b1, w2, b2, w3, b3):
    h1 = jnp.maximum(x @ w1 + b1, 0.0)
    h2 = jnp.maximum(h1 @ w2 + b2, 0.0)
    return h2 @ w3 + b3


if __name__ == "__main__":
    # Small shapes consistent with MLPNetwork(input_dim=16, output_dim=8,
    # hidden_size=32) applied to a batch of 16 state vectors.
    batch, input_dim, hidden_size, output_dim = 16, 16, 32, 8

    key = jax.random.PRNGKey(0)
    kx, k1, k2, k3 = jax.random.split(key, 4)

    x = jax.random.normal(kx, (batch, input_dim), jnp.float32)
    w1, b1 = init_linear_params(k1, input_dim, hidden_size)
    w2, b2 = init_linear_params(k2, hidden_size, hidden_size)
    w3, b3 = init_linear_params(k3, hidden_size, output_dim)

    ref = mlp_reference(x, w1, b1, w2, b2, w3, b3)

    # Exact path: f32 MXU inputs (bit-faithful to the PyTorch module).
    params_f32 = prepare_params(w1, b1, w2, b2, w3, b3,
                                compute_dtype=jnp.float32)
    out_f32 = jax.block_until_ready(
        mlp_forward(x, *params_f32, out_dim=output_dim))
    assert out_f32.shape == (batch, output_dim), out_f32.shape
    assert jnp.allclose(out_f32, ref, atol=1e-5, rtol=1e-5), "f32 mismatch"

    # Default fast path: bf16 MXU inputs (native on v5e/v6e/v7x), f32
    # accumulate/bias/ReLU -- error does not grow with hidden size.
    params_bf16 = prepare_params(w1, b1, w2, b2, w3, b3)
    out_bf16 = jax.block_until_ready(
        mlp_forward(x, *params_bf16, out_dim=output_dim))
    assert out_bf16.shape == (batch, output_dim), out_bf16.shape
    assert jnp.allclose(out_bf16, ref, atol=5e-2, rtol=5e-2), "bf16 mismatch"

    # Odd batch: exercises batch padding + 2-step "parallel" grid (v7x TCs).
    x_big = jax.random.normal(kx, (100, input_dim), jnp.float32)
    ref_big = mlp_reference(x_big, w1, b1, w2, b2, w3, b3)
    out_big = jax.block_until_ready(
        mlp_forward(x_big, *params_bf16, out_dim=output_dim))
    assert out_big.shape == (100, output_dim), out_big.shape
    assert jnp.allclose(out_big, ref_big, atol=5e-2, rtol=5e-2), "big-batch mismatch"

    print("KERNEL_OK")
</pallas_src>

<mosaic_0001>
module attributes {stable_mosaic.version = 11 : i64} {
  func.func @_mlp_kernel(%arg0: i32, %arg1: memref<16x16xf32, #tpu.memory_space<vmem>>, %arg2: memref<16x128xf32, #tpu.memory_space<vmem>>, %arg3: memref<1x128xf32, #tpu.memory_space<vmem>>, %arg4: memref<128x128xf32, #tpu.memory_space<vmem>>, %arg5: memref<1x128xf32, #tpu.memory_space<vmem>>, %arg6: memref<128x128xf32, #tpu.memory_space<vmem>>, %arg7: memref<1x128xf32, #tpu.memory_space<vmem>>, %arg8: memref<16x128xf32, #tpu.memory_space<vmem>>) attributes {dimension_semantics = [#tpu.dimension_semantics<parallel>], iteration_bounds = array<i64: 1>, scalar_prefetch = 0 : i64, scratch_operands = 0 : i64, tpu.core_type = #tpu.core_type<tc>, window_params = [{transform_indices = @transform_0, window_bounds = array<i64: 16, 16>}, {pipeline_mode = #tpu.pipeline_mode<synchronous>, transform_indices = @transform_1, window_bounds = array<i64: 16, 128>}, {pipeline_mode = #tpu.pipeline_mode<synchronous>, transform_indices = @transform_2, window_bounds = array<i64: 1, 128>}, {pipeline_mode = #tpu.pipeline_mode<synchronous>, transform_indices = @transform_3, window_bounds = array<i64: 128, 128>}, {pipeline_mode = #tpu.pipeline_mode<synchronous>, transform_indices = @transform_4, window_bounds = array<i64: 1, 128>}, {pipeline_mode = #tpu.pipeline_mode<synchronous>, transform_indices = @transform_5, window_bounds = array<i64: 128, 128>}, {pipeline_mode = #tpu.pipeline_mode<synchronous>, transform_indices = @transform_6, window_bounds = array<i64: 1, 128>}, {transform_indices = @transform_7, window_bounds = array<i64: 16, 128>}]} {
    %c0 = arith.constant 0 : index
    %c0_0 = arith.constant 0 : index
    %0 = vector.load %arg1[%c0, %c0_0] : memref<16x16xf32, #tpu.memory_space<vmem>>, vector<16x16xf32>
    %c0_1 = arith.constant 0 : index
    %c0_2 = arith.constant 0 : index
    %1 = vector.load %arg2[%c0_1, %c0_2] : memref<16x128xf32, #tpu.memory_space<vmem>>, vector<16x128xf32>
    %cst = arith.constant dense<0.000000e+00> : vector<16x128xf32>
    %2 = tpu.matmul %0, %1, %cst {dimension_numbers = #tpu.dot_dimension_numbers<[1], [0], [0], [1], [0, 0, 1, 1], [], []>} : vector<16x16xf32>, vector<16x128xf32>, vector<16x128xf32> -> vector<16x128xf32>
    %c0_3 = arith.constant 0 : index
    %c0_4 = arith.constant 0 : index
    %3 = vector.load %arg3[%c0_3, %c0_4] : memref<1x128xf32, #tpu.memory_space<vmem>>, vector<1x128xf32>
    %4 = vector.broadcast %3 : vector<1x128xf32> to vector<16x128xf32>
    %5 = arith.addf %2, %4 : vector<16x128xf32>
    %cst_5 = arith.constant 0.000000e+00 : f32
    %6 = vector.broadcast %cst_5 : f32 to vector<16x128xf32>
    %7 = arith.maximumf %5, %6 : vector<16x128xf32>
    %c0_6 = arith.constant 0 : index
    %c0_7 = arith.constant 0 : index
    %8 = vector.load %arg4[%c0_6, %c0_7] : memref<128x128xf32, #tpu.memory_space<vmem>>, vector<128x128xf32>
    %cst_8 = arith.constant dense<0.000000e+00> : vector<16x128xf32>
    %9 = tpu.matmul %7, %8, %cst_8 {dimension_numbers = #tpu.dot_dimension_numbers<[1], [0], [0], [1], [0, 0, 1, 1], [], []>} : vector<16x128xf32>, vector<128x128xf32>, vector<16x128xf32> -> vector<16x128xf32>
    %c0_9 = arith.constant 0 : index
    %c0_10 = arith.constant 0 : index
    %10 = vector.load %arg5[%c0_9, %c0_10] : memref<1x128xf32, #tpu.memory_space<vmem>>, vector<1x128xf32>
    %11 = vector.broadcast %10 : vector<1x128xf32> to vector<16x128xf32>
    %12 = arith.addf %9, %11 : vector<16x128xf32>
    %cst_11 = arith.constant 0.000000e+00 : f32
    %13 = vector.broadcast %cst_11 : f32 to vector<16x128xf32>
    %14 = arith.maximumf %12, %13 : vector<16x128xf32>
    %c0_12 = arith.constant 0 : index
    %c0_13 = arith.constant 0 : index
    %15 = vector.load %arg6[%c0_12, %c0_13] : memref<128x128xf32, #tpu.memory_space<vmem>>, vector<128x128xf32>
    %cst_14 = arith.constant dense<0.000000e+00> : vector<16x128xf32>
    %16 = tpu.matmul %14, %15, %cst_14 {dimension_numbers = #tpu.dot_dimension_numbers<[1], [0], [0], [1], [0, 0, 1, 1], [], []>} : vector<16x128xf32>, vector<128x128xf32>, vector<16x128xf32> -> vector<16x128xf32>
    %c0_15 = arith.constant 0 : index
    %c0_16 = arith.constant 0 : index
    %17 = vector.load %arg7[%c0_15, %c0_16] : memref<1x128xf32, #tpu.memory_space<vmem>>, vector<1x128xf32>
    %18 = vector.broadcast %17 : vector<1x128xf32> to vector<16x128xf32>
    %19 = arith.addf %16, %18 : vector<16x128xf32>
    %c0_17 = arith.constant 0 : index
    %c0_18 = arith.constant 0 : index
    %20 = vector.load %arg8[%c0_17, %c0_18] : memref<16x128xf32, #tpu.memory_space<vmem>>, vector<16x128xf32>
    tpu.vector_store %arg8[%c0_17, %c0_18], %19 {strides = array<i32>} : memref<16x128xf32, #tpu.memory_space<vmem>>, vector<16x128xf32>,
    return
  }
  func.func @transform_0(%arg0: i32) -> (i32, i32) {
    %c0_i32 = arith.constant 0 : i32
    %c0_i32_0 = arith.constant 0 : i32
    return %arg0, %c0_i32 : i32, i32
  }
  func.func @transform_1(%arg0: i32) -> (i32, i32) {
    %c0_i32 = arith.constant 0 : i32
    %c0_i32_0 = arith.constant 0 : i32
    %c0_i32_1 = arith.constant 0 : i32
    return %c0_i32, %c0_i32_0 : i32, i32
  }
  func.func @transform_2(%arg0: i32) -> (i32, i32) {
    %c0_i32 = arith.constant 0 : i32
    %c0_i32_0 = arith.constant 0 : i32
    %c0_i32_1 = arith.constant 0 : i32
    return %c0_i32, %c0_i32_0 : i32, i32
  }
  func.func @transform_3(%arg0: i32) -> (i32, i32) {
    %c0_i32 = arith.constant 0 : i32
    %c0_i32_0 = arith.constant 0 : i32
    %c0_i32_1 = arith.constant 0 : i32
    return %c0_i32, %c0_i32_0 : i32, i32
  }
  func.func @transform_4(%arg0: i32) -> (i32, i32) {
    %c0_i32 = arith.constant 0 : i32
    %c0_i32_0 = arith.constant 0 : i32
    %c0_i32_1 = arith.constant 0 : i32
    return %c0_i32, %c0_i32_0 : i32, i32
  }
  func.func @transform_5(%arg0: i32) -> (i32, i32) {
    %c0_i32 = arith.constant 0 : i32
    %c0_i32_0 = arith.constant 0 : i32
    %c0_i32_1 = arith.constant 0 : i32
    return %c0_i32, %c0_i32_0 : i32, i32
  }
  func.func @transform_6(%arg0: i32) -> (i32, i32) {
    %c0_i32 = arith.constant 0 : i32
    %c0_i32_0 = arith.constant 0 : i32
    %c0_i32_1 = arith.constant 0 : i32
    return %c0_i32, %c0_i32_0 : i32, i32
  }
  func.func @transform_7(%arg0: i32) -> (i32, i32) {
    %c0_i32 = arith.constant 0 : i32
    %c0_i32_0 = arith.constant 0 : i32
    return %arg0, %c0_i32 : i32, i32
  }
}

</mosaic_0001>

<bundles_post_ra>
// kernel: mlp_forward.1
= control target key start
LH: loop header
LB: loop body
LE: loop exit
PB: predicated region body
PF: predicated region fallthrough
CT: control target
= control target key end

     0   :  { %12 = vsyncpa [#allocation3], 0  ;;  %s810_s0 = inlined_call_operand.hbm [shape: f32[16,16], index: 0, kind: input, shape index: {}]   ;;  %s811_s1 = inlined_call_operand.hbm [shape: f32[16,128], index: 1, kind: input, shape index: {}]   ;;  %s812_s2 = inlined_call_operand.vmem [shape: f32[1,128], index: 2, kind: input, shape index: {}]   ;;  %s813_s3 = inlined_call_operand.hbm [shape: f32[128,128], index: 3, kind: input, shape index: {}]   ;;  %s814_s4 = inlined_call_operand.vmem [shape: f32[1,128], index: 4, kind: input, shape index: {}]   ;;  %s815_s5 = inlined_call_operand.hbm [shape: f32[128,128], index: 5, kind: input, shape index: {}]   ;;  %s816_s6 = inlined_call_operand.vmem [shape: f32[1,128], index: 6, kind: input, shape index: {}]   ;;  %s817_s7 = inlined_call_operand.vmem [shape: f32[16,128], index: 7, kind: output, shape index: {}]  }
   0x1   :  { %13 = vsyncpa [#allocation5], 0 }
   0x2   :  { %14 = vsyncpa [#allocation8], 0  ;;  %s673_s24 = smov [#allocation4]   ;;  %s674_s26 = smov [#allocation2]  }
   0x3   :  { %s32_s25 = sshll.u32 %s673_s24, 4  ;;  %s20_s27 = sshll.u32 %s674_s26, 4  ;;  %s33_s25 = int_to_ptr.vmem [resolvable:$true] %s32_s25  ;;  %s719_s27 = int_to_ptr.vmem [resolvable:$true] %s20_s27 }
   0x4   :  { %s579_s30 = scalar_lea.hbm %s811_s1, 256 }
   0x5   :  { %p580_p0 = scmp.ne.s32.totalorder %s811_s1, %s579_s30  ;;  %p583_p1 = scmp.lt.u32.totalorder %s579_s30, %s811_s1 }
   0x7   :  { %p585_p2 = pnand %p583_p1, %p580_p0 }
   0x9   :  { %588 = shalt.err (!%p585_p2)
}
   0xa   :  { %s589_s12 = scalar_lea.vmem %s33_s25, 256  ;;  %p594_p4 = scmp.lt.s32.totalorder %s33_s25, %s33_s25 }
   0xb   :  { %p590_p3 = scmp.ne.s32.totalorder %s33_s25, %s589_s12  ;;  %p595_p5 = scmp.lt.s32.totalorder %s589_s12, %s589_s12 }
   0xd   :  { %p596_p6 = por %p595_p5, %p594_p4 }
   0xf   :  { %p597_p7 = pnand %p596_p6, %p590_p3 }
  0x11   :  { %600 = shalt.err (!%p597_p7)
}
  0x12   :  { %s675_s13 = smov 128   ;;  %s676_s14 = smov 8  }
  0x13   :  { %38 = dma.hbm_to_vmem [thread:$0]  %s811_s1, 256, %s33_s25, [#allocation5], %s675_s13, %s675_s13, %s676_s14  }
  0x14   :  { %s601_s19 = scalar_lea.hbm %s810_s0, 256 }
  0x15   :  { %p602_p8 = scmp.ne.s32.totalorder %s810_s0, %s601_s19  ;;  %p605_p9 = scmp.lt.u32.totalorder %s601_s19, %s810_s0 }
  0x17   :  { %p607_p10 = pnand %p605_p9, %p602_p8 }
  0x19   :  { %610 = shalt.err (!%p607_p10)
}
  0x1a   :  { %s611_s24 = scalar_lea.vmem %s719_s27, 256  ;;  %p616_p12 = scmp.lt.s32.totalorder %s719_s27, %s719_s27 }
  0x1b   :  { %p612_p11 = scmp.ne.s32.totalorder %s719_s27, %s611_s24  ;;  %p617_p13 = scmp.lt.s32.totalorder %s611_s24, %s611_s24 }
  0x1d   :  { %p618_p0 = por %p617_p13, %p616_p12 }
  0x1f   :  { %p619_p1 = pnand %p618_p0, %p612_p11 }
  0x21   :  { %622 = shalt.err (!%p619_p1)
}
  0x22   :  { %26 = dma.hbm_to_vmem [thread:$0]  %s810_s0, 256, %s719_s27, [#allocation3], %s675_s13, %s675_s13, %s676_s14  }
  0x23   :  { %s677_s26 = smov [#allocation6]   ;;  %s678_s29 = smov [#allocation7]  }
  0x24   :  { %s46_s28 = sshll.u32 %s677_s26, 4  ;;  %s60_s30 = sshll.u32 %s678_s29, 4  ;;  %s47_s28 = int_to_ptr.vmem [resolvable:$true] %s46_s28  ;;  %s756_s30 = int_to_ptr.vmem [resolvable:$true] %s60_s30 }
  0x25   :  { %s623_s10 = scalar_lea.hbm %s813_s3, 2048 }
  0x26   :  { %p624_p2 = scmp.ne.s32.totalorder %s813_s3, %s623_s10  ;;  %p627_p3 = scmp.lt.u32.totalorder %s623_s10, %s813_s3 }
  0x28   :  { %p629_p4 = pnand %p627_p3, %p624_p2 }
  0x2a   :  { %632 = shalt.err (!%p629_p4)
}
  0x2b   :  { %s633_s0 = scalar_lea.vmem %s47_s28, 2048  ;;  %p638_p6 = scmp.lt.s32.totalorder %s47_s28, %s47_s28 }
  0x2c   :  { %p634_p5 = scmp.ne.s32.totalorder %s47_s28, %s633_s0  ;;  %p639_p7 = scmp.lt.s32.totalorder %s633_s0, %s633_s0 }
  0x2e   :  { %p640_p8 = por %p639_p7, %p638_p6 }
  0x30   :  { %p641_p9 = pnand %p640_p8, %p634_p5 }
  0x32   :  { %644 = shalt.err (!%p641_p9)
}
  0x33   :  { %52 = dma.hbm_to_vmem [thread:$0]  %s813_s3, 2048, %s47_s28, [#allocation5], %s675_s13, %s675_s13, %s676_s14  }
  0x34   :  { %s645_s20 = scalar_lea.hbm %s815_s5, 2048 }
  0x35   :  { %p646_p10 = scmp.ne.s32.totalorder %s815_s5, %s645_s20  ;;  %p649_p11 = scmp.lt.u32.totalorder %s645_s20, %s815_s5 }
  0x37   :  { %p651_p12 = pnand %p649_p11, %p646_p10 }
  0x39   :  { %654 = shalt.err (!%p651_p12)
}
  0x3a   :  { %s655_s1 = scalar_lea.vmem %s756_s30, 2048  ;;  %p660_p0 = scmp.lt.s32.totalorder %s756_s30, %s756_s30 }
  0x3b   :  { %p656_p13 = scmp.ne.s32.totalorder %s756_s30, %s655_s1  ;;  %p661_p1 = scmp.lt.s32.totalorder %s655_s1, %s655_s1 }
  0x3d   :  { %p662_p2 = por %p661_p1, %p660_p0 }
  0x3f   :  { %p663_p3 = pnand %p662_p2, %p656_p13 }
  0x41   :  { %666 = shalt.err (!%p663_p3)
}
  0x42   :  { %66 = dma.hbm_to_vmem [thread:$0]  %s815_s5, 2048, %s756_s30, [#allocation8], %s675_s13, %s675_s13, %s676_s14  }
  0x43   :  { %667 = dma.done.wait [#allocation3], 256  }
  0x44   :  { %668 = vsyncadd [#allocation3], 4294967040 }
  0x45   :  { %669 = dma.done.wait [#allocation5], 2304  }
  0x46   :  { %670 = vsyncadd [#allocation5], 4294964992 }
  0x47   :  { %671 = dma.done.wait [#allocation8], 2048  }
  0x48   :  { %672 = vsyncadd [#allocation8], 4294965248  ;;  %vm92_vm0 = vcmask 130048   ;;  %v83_v0 = vld [vmem:[#allocation4] sm:$0xff]  ;;  %v84_v1 = vld [vmem:[#allocation4 + $0x8] sm:$0xff] }
  0x49   :  { %v81_v2 = vld [vmem:[#allocation2] sm:$0xff]  ;;  %v505_v3 = vpack.c.bf16 %v84_v1, %v83_v0  ;;  %v177_v5 = vld [vmem:[#allocation6 + $0x8] sm:$0xff]  ;;  %v178_v7 = vld [vmem:[#allocation6 + $0x10] sm:$0xff] }
  0x4a   :  { %432 = vmatprep.mubr.msk.f32.mxu0 %vm92_vm0, %v81_v2  ;;  %v176_v4 = vld [vmem:[#allocation6] sm:$0xff]  ;;  %v179_v8 = vld [vmem:[#allocation6 + $0x18] sm:$0xff]  ;;  %v181_v11 = vld [vmem:[#allocation6 + $0x28] sm:$0xff] }
  0x4b   :  { %v509_v6 = vpack.c.bf16 %v177_v5, %v176_v4  ;;  %506 = vmatprep.subr.bf16.mxu0 %v505_v3  ;;  %v513_v9 = vpack.c.bf16 %v179_v8, %v178_v7  ;;  %v180_v10 = vld [vmem:[#allocation6 + $0x20] sm:$0xff]  ;;  %v82_v12 = vld [vmem:[#allocation2 + $0x8] sm:$0xff]  ;;  %v182_v14 = vld [vmem:[#allocation6 + $0x30] sm:$0xff] }
  0x4c   :  { %508 = vmatpush3.bf16.msra.mxu0 %v505_v3  ;;  %v517_v13 = vpack.c.bf16 %v181_v11, %v180_v10  ;;  %v183_v15 = vld [vmem:[#allocation6 + $0x38] sm:$0xff]  ;;  %v184_v17 = vld [vmem:[#allocation6 + $0x40] sm:$0xff]  ;;  %v185_v18 = vld [vmem:[#allocation6 + $0x48] sm:$0xff] }
  0x4d   :  { %510 = vmatprep.subr.bf16.mxu1 %v509_v6  ;;  %v521_v16 = vpack.c.bf16 %v183_v15, %v182_v14  ;;  %v525_v19 = vpack.c.bf16 %v185_v18, %v184_v17  ;;  %v186_v20 = vld [vmem:[#allocation6 + $0x50] sm:$0xff]  ;;  %v187_v21 = vld [vmem:[#allocation6 + $0x58] sm:$0xff]  ;;  %v188_v23 = vld [vmem:[#allocation6 + $0x60] sm:$0xff] }
  0x4e   :  { %512 = vmatpush3.bf16.msra.mxu1 %v509_v6  ;;  %v529_v22 = vpack.c.bf16 %v187_v21, %v186_v20  ;;  %v189_v24 = vld [vmem:[#allocation6 + $0x68] sm:$0xff]  ;;  %v190_v26 = vld [vmem:[#allocation6 + $0x70] sm:$0xff]  ;;  %v191_v27 = vld [vmem:[#allocation6 + $0x78] sm:$0xff] }
  0x4f   :  { %514 = vmatprep.subr.bf16.mxu1 %v513_v9  ;;  %433 = vmatmul.mubr.msk.f32.vlgmr.msra.gmra.mrb[0].mxu0 %vm92_vm0, %v82_v12  ;;  %v533_v25 = vpack.c.bf16 %v189_v24, %v188_v23  ;;  %v537_v28 = vpack.c.bf16 %v191_v27, %v190_v26  ;;  %v276_v29 = vld [vmem:[#allocation7] sm:$0xff]  ;;  %v277_v30 = vld [vmem:[#allocation7 + $0x8] sm:$0xff]  ;;  %v278_v31 = vld [vmem:[#allocation7 + $0x10] sm:$0xff] }
  0x50   :  { %v541_v32 = vpack.c.bf16 %v277_v30, %v276_v29  ;;  %v279_v33 = vld [vmem:[#allocation7 + $0x18] sm:$0xff]  ;;  %v280_v35 = vld [vmem:[#allocation7 + $0x20] sm:$0xff]  ;;  %v281_v36 = vld [vmem:[#allocation7 + $0x28] sm:$0xff] }
  0x51   :  { %v545_v34 = vpack.c.bf16 %v279_v33, %v278_v31  ;;  %v549_v37 = vpack.c.bf16 %v281_v36, %v280_v35  ;;  %v282_v38 = vld [vmem:[#allocation7 + $0x30] sm:$0xff]  ;;  %v283_v39 = vld [vmem:[#allocation7 + $0x38] sm:$0xff]  ;;  %v284_v41 = vld [vmem:[#allocation7 + $0x40] sm:$0xff] }
  0x52   :  { %516 = vmatpush3.bf16.msra.mxu1 %v513_v9  ;;  %542 = vmatprep.subr.bf16.mxu0 %v541_v32  ;;  %v553_v40 = vpack.c.bf16 %v283_v39, %v282_v38  ;;  %v285_v42 = vld [vmem:[#allocation7 + $0x48] sm:$0xff]  ;;  %v286_v44 = vld [vmem:[#allocation7 + $0x50] sm:$0xff]  ;;  %v287_v45 = vld [vmem:[#allocation7 + $0x58] sm:$0xff] }
  0x53   :  { %518 = vmatprep.subr.bf16.mxu1 %v517_v13  ;;  %544 = vmatpush3.bf16.msra.mxu0 %v541_v32  ;;  %v557_v43 = vpack.c.bf16 %v285_v42, %v284_v41  ;;  %v561_v46 = vpack.c.bf16 %v287_v45, %v286_v44  ;;  %v288_v47 = vld [vmem:[#allocation7 + $0x60] sm:$0xff]  ;;  %v289_v48 = vld [vmem:[#allocation7 + $0x68] sm:$0xff]  ;;  %v290_v57 = vld [vmem:[#allocation7 + $0x70] sm:$0xff] }
  0x54   :  { %546 = vmatprep.subr.bf16.mxu0 %v545_v34  ;;  %v565_v49 = vpack.c.bf16 %v289_v48, %v288_v47  ;;  %v383_v50 = vld [vmem:[%s812_s2] ss:$0 sm:$0xff]  ;;  %v291_v58 = vld [vmem:[#allocation7 + $0x78] sm:$0xff] }
  0x55   :  { %v569_v59 = vpack.c.bf16 %v291_v58, %v290_v57  ;;  %v386_v60 = vld [vmem:[%s814_s4] ss:$0 sm:$0xff] }
  0x56   :  { %520 = vmatpush3.bf16.msra.mxu1 %v517_v13  ;;  %v387_v3 = vld [vmem:[%s816_s6] ss:$0 sm:$0xff] }
  0x57   :  { %522 = vmatprep.subr.bf16.mxu1 %v521_v16  ;;  %548 = vmatpush3.bf16.msra.mxu0 %v545_v34 }
  0x58   :  { %550 = vmatprep.subr.bf16.mxu0 %v549_v37 }
  0x5a   :  { %524 = vmatpush3.bf16.msra.mxu1 %v521_v16 }
  0x5b   :  { %526 = vmatprep.subr.bf16.mxu1 %v525_v19  ;;  %552 = vmatpush3.bf16.msra.mxu0 %v549_v37 }
  0x5c   :  { %554 = vmatprep.subr.bf16.mxu0 %v553_v40 }
  0x5e   :  { %528 = vmatpush3.bf16.msra.mxu1 %v525_v19 }
  0x5f   :  { %530 = vmatprep.subr.bf16.mxu1 %v529_v22  ;;  %556 = vmatpush3.bf16.msra.mxu0 %v553_v40 }
  0x60   :  { %558 = vmatprep.subr.bf16.mxu0 %v557_v43 }
  0x62   :  { %532 = vmatpush3.bf16.msra.mxu1 %v529_v22 }
  0x63   :  { %534 = vmatprep.subr.bf16.mxu1 %v533_v25  ;;  %560 = vmatpush3.bf16.msra.mxu0 %v557_v43 }
  0x64   :  { %562 = vmatprep.subr.bf16.mxu0 %v561_v46 }
  0x66   :  { %536 = vmatpush3.bf16.msra.mxu1 %v533_v25 }
  0x67   :  { %538 = vmatprep.subr.bf16.mxu1 %v537_v28  ;;  %564 = vmatpush3.bf16.msra.mxu0 %v561_v46 }
  0x68   :  { %566 = vmatprep.subr.bf16.mxu0 %v565_v49 }
  0x6a   :  { %540 = vmatpush3.bf16.msra.mxu1 %v537_v28 }
  0x6b   :  { %568 = vmatpush3.bf16.msra.mxu0 %v565_v49 }
  0x6c   :  { %570 = vmatprep.subr.bf16.mxu0 %v569_v59 }
  0x6f   :  { %572 = vmatpush3.bf16.msra.mxu0 %v569_v59 }
 0x122   :  { %v434_v51 = vpop.f32.mrb[0].mxu0 }
 0x123   :  { %v171_v52 = vadd.f32 %v434_v51, %v383_v50  ;;  %v165_v53 = vpop.f32.mrb[1].mxu0 }
 0x124   :  { %v166_v54 = vadd.f32 %v383_v50, %v165_v53 }
 0x125   :  { %v175_v56 = vmax.f32 %v171_v52, 0.0 }
 0x126   :  { %v174_v55 = vmax.f32 %v166_v54, 0.0 }
 0x128   :  { %467 = vmatprep.mubr.f32.mxu1 %v174_v55 }
 0x129   :  { %468 = vmatmul.mubr.f32.vlgmr.msra.gmra.mrb[0].mxu1 %v175_v56 }
 0x1fc   :  { %v469_v61 = vpop.f32.mrb[0].mxu1 }
 0x1fd   :  { %v271_v62 = vadd.f32 %v469_v61, %v386_v60  ;;  %v265_v63 = vpop.f32.mrb[1].mxu1 }
 0x1fe   :  { %v266_v0 = vadd.f32 %v386_v60, %v265_v63 }
 0x1ff   :  { %v275_v2 = vmax.f32 %v271_v62, 0.0 }
 0x200   :  { %v274_v1 = vmax.f32 %v266_v0, 0.0 }
 0x202   :  { %502 = vmatprep.mubr.f32.mxu0 %v274_v1 }
 0x203   :  { %503 = vmatmul.mubr.f32.vlgmr.msra.gmra.mrb[2].mxu0 %v275_v2 }
 0x2d6   :  { %v504_v4 = vpop.f32.mrb[2].mxu0 }
 0x2d7   :  { %v371_v5 = vadd.f32 %v504_v4, %v387_v3  ;;  %v365_v6 = vpop.f32.mrb[3].mxu0 }
 0x2d8   :  { %v366_v7 = vadd.f32 %v387_v3, %v365_v6 }
 0x2d9   :  { %375 = vst [vmem:[%s817_s7 + $0x8] sm:$0xff] %v371_v5 }
 0x2da   :  { %374 = vst [vmem:[%s817_s7] sm:$0xff] %v366_v7 }
 0x2db   :  { %380 = vsyncpa [#allocation3], 1 }
 0x2dc   :  { %381 = vsyncpa [#allocation5], 1 }
 0x2dd   :  { %382 = vsyncpa [#allocation8], 1 }

</bundles_post_ra>
